<compile_context>
chip_gen: v6e
topology: v6e:2x2x1
jax: 0.10.0
libtpu: 0.0.40
codegen_flags: <defaults>
</compile_context>

<pallas_src>
import functools
import math

import jax
import jax.numpy as jnp
from jax.experimental import pallas as pl
from jax.experimental.pallas import tpu as pltpu

_INV_SQRT2 = 1.0 / math.sqrt(2.0)
_SQRT_2_OVER_PI = math.sqrt(2.0 / math.pi)


def _round_up(x, m):
    return ((x + m - 1) // m) * m


def _cdiv(a, b):
    return -(-a // b)


def _epilogue(h, b, g, be, o_ref, *, eps, approx_gelu):
    """bias + GELU + LayerNorm on an f32 (tm, H) tile; writes o_ref."""
    h = h + b
    if approx_gelu:
        # tanh-approx GELU: transcendental runs on the EUP slot instead of the
        # saturated VALU slot. NOTE: not bit-identical to exact-erf gelu.
        h = 0.5 * h * (1.0 + jnp.tanh(_SQRT_2_OVER_PI * (h + 0.044715 * h * h * h)))
    else:
        # Exact erf GELU (matches the PyTorch reference).
        h = h * 0.5 * (1.0 + jax.lax.erf(h * _INV_SQRT2))
    # LayerNorm, two-pass biased variance (torch.nn.LayerNorm parity).
    mean = jnp.mean(h, axis=-1, keepdims=True)
    centered = h - mean
    var = jnp.mean(centered * centered, axis=-1, keepdims=True)
    y = centered * jax.lax.rsqrt(var + eps)
    o_ref[...] = (y * g + be).astype(o_ref.dtype)


def _fused_kernel(x_ref, w_ref, b_ref, g_ref, be_ref, o_ref, *, eps, approx_gelu):
    # x_ref: (tm, K) row tile; w_ref: full (K, H) resident weight in [in, out]
    # layout (pre-transposed on the host) -> plain A @ B, f32 accumulation.
    h = jnp.dot(x_ref[...], w_ref[...], preferred_element_type=jnp.float32)
    _epilogue(h, b_ref[...], g_ref[...], be_ref[...], o_ref,
              eps=eps, approx_gelu=approx_gelu)


def _ktiled_kernel(x_ref, w_ref, b_ref, g_ref, be_ref, o_ref, acc_ref, *,
                   eps, approx_gelu):
    # Grid = (row tiles, K tiles); K is the trailing "arbitrary" reduction axis.
    k = pl.program_id(1)

    @pl.when(k == 0)
    def _():
        acc_ref[...] = jnp.zeros_like(acc_ref)

    acc_ref[...] += jnp.dot(x_ref[...], w_ref[...],
                            preferred_element_type=jnp.float32)

    @pl.when(k == pl.num_programs(1) - 1)
    def _():
        _epilogue(acc_ref[...], b_ref[...], g_ref[...], be_ref[...], o_ref,
                  eps=eps, approx_gelu=approx_gelu)


def _vmem_limit_bytes():
    cap = 64 * 1024 * 1024          # conservative fallback (v7x per-TC VMEM)
    try:
        cap = int(getattr(pltpu.get_tpu_info(), "vmem_capacity_bytes", cap))
    except Exception:
        pass
    # Leave >=8 MiB for Mosaic internal scratch / semaphores; never request
    # more than 112 MiB even on the 128 MiB chips (v5e / v6e).
    return max(16 * 1024 * 1024, min(cap - 8 * 1024 * 1024, 112 * 1024 * 1024))


def bert_prediction_head_transform(x, weight, bias, gamma, beta, *,
                                   eps=1e-12, tile_m=512,
                                   approx_gelu=False, matmul_in_bf16=False):
    """x: [B, S, H]; weight: [H, H] torch nn.Linear layout (y = x @ W.T + b)."""
    B, S, H = x.shape
    M = B * S
    out_dtype = x.dtype

    x2 = x.reshape(M, H)
    w_t = weight.T                       # one-time host transpose -> [in, out]
    if matmul_in_bf16:                   # opt-in (numerics change), mainly v5e
        x2 = x2.astype(jnp.bfloat16)
        w_t = w_t.astype(jnp.bfloat16)

    # Bias / LN params as f32 (1, H) once in the wrapper (no per-step casts).
    b2 = bias.astype(jnp.float32).reshape(1, H)
    g2 = gamma.astype(jnp.float32).reshape(1, H)
    be2 = beta.astype(jnp.float32).reshape(1, H)

    x_it = jnp.dtype(x2.dtype).itemsize
    w_it = jnp.dtype(w_t.dtype).itemsize
    o_it = jnp.dtype(out_dtype).itemsize
    sublane = 16 if x_it == 2 else 8

    vmem_limit = _vmem_limit_bytes()
    budget = vmem_limit - 2 * 1024 * 1024     # small slack for temporaries

    weight_bytes = H * H * w_it               # resident, single-buffered
    use_fused = weight_bytes <= budget // 2

    if use_fused:
        tk, k_steps = H, 1
        # Per-row VMEM: double-buffered x tile + double-buffered out tile +
        # ~3 f32 (tm, H) epilogue intermediates.
        per_row = 2 * H * x_it + 2 * H * o_it + 3 * H * 4
        avail = budget - weight_bytes - 3 * 2 * H * 4
    else:
        # K-tiled fallback: pick tk (multiple of 128) so the double-buffered
        # (tk, H) weight slab uses at most half the budget.
        tk = max(128, ((budget // 2) // (2 * H * w_it)) // 128 * 128)
        tk = min(tk, _round_up(H, 128))
        k_steps = _cdiv(H, tk)
        per_row = 2 * tk * x_it + 2 * H * o_it + H * 4 + 3 * H * 4
        avail = budget - 2 * tk * H * w_it - 3 * 2 * H * 4

    # Row tile: as large as the budget allows, but guarantee >=2 grid steps
    # along the row axis (both v7x TensorCores get work) when possible.
    max_tm = max(sublane, (avail // per_row) // sublane * sublane) if avail > 0 else sublane
    tm = min(_round_up(tile_m, sublane), _round_up(M, sublane), max_tm)
    if M > sublane:
        tm = min(tm, _round_up(_cdiv(M, 2), sublane))
    tm = max(tm, sublane)

    # Zero-pad rows (and, for the K-tiled path, the contraction dim).
    m_pad = _round_up(M, tm)
    k_pad = tk * k_steps
    if m_pad != M or k_pad != H:
        x2 = jnp.pad(x2, ((0, m_pad - M), (0, k_pad - H)))
    if k_pad != H:
        w_t = jnp.pad(w_t, ((0, k_pad - H), (0, 0)))

    # Whole-array, single-copy VMEM residents (no double buffering).
    resident = pl.BlockSpec(memory_space=pltpu.MemorySpace.VMEM)

    if use_fused:
        kernel = functools.partial(_fused_kernel, eps=eps, approx_gelu=approx_gelu)
        grid_spec = pltpu.PrefetchScalarGridSpec(
            num_scalar_prefetch=0,
            grid=(m_pad // tm,),
            in_specs=[
                pl.BlockSpec((tm, H), lambda i: (i, 0)),   # x row tiles
                resident,                                   # W^T, single copy
                resident, resident, resident,               # bias, gamma, beta
            ],
            out_specs=pl.BlockSpec((tm, H), lambda i: (i, 0)),
        )
        dims = ("parallel",)
    else:
        kernel = functools.partial(_ktiled_kernel, eps=eps, approx_gelu=approx_gelu)
        grid_spec = pltpu.PrefetchScalarGridSpec(
            num_scalar_prefetch=0,
            grid=(m_pad // tm, k_steps),
            in_specs=[
                pl.BlockSpec((tm, tk), lambda i, k: (i, k)),   # x row/K tiles
                pl.BlockSpec((tk, H), lambda i, k: (k, 0)),    # W^T K slabs
                resident, resident, resident,                   # bias, gamma, beta
            ],
            out_specs=pl.BlockSpec((tm, H), lambda i, k: (i, 0)),
            scratch_shapes=[pltpu.VMEM((tm, H), jnp.float32)],
        )
        dims = ("parallel", "arbitrary")

    out = pl.pallas_call(
        kernel,
        out_shape=jax.ShapeDtypeStruct((m_pad, H), out_dtype),
        grid_spec=grid_spec,
        compiler_params=pltpu.CompilerParams(
            dimension_semantics=dims,
            vmem_limit_bytes=int(vmem_limit),
        ),
    )(x2, w_t, b2, g2, be2)

    return out[:M].reshape(B, S, H)


def _reference(x, weight, bias, gamma, beta, eps=1e-12):
    h = jnp.einsum("bsh,oh->bso", x, weight) + bias
    h = h * 0.5 * (1.0 + jax.lax.erf(h * _INV_SQRT2))
    mean = jnp.mean(h, axis=-1, keepdims=True)
    var = jnp.mean((h - mean) ** 2, axis=-1, keepdims=True)
    return (h - mean) * jax.lax.rsqrt(var + eps) * gamma + beta


if __name__ == "__main__":
    B, S, H = 2, 8, 128   # batch=2, seq=8, hidden=128
    key = jax.random.PRNGKey(0)
    kx, kw, kb, kg, kbe = jax.random.split(key, 5)

    x = jax.random.normal(kx, (B, S, H), dtype=jnp.float32)
    # Deterministic synthetic parameters (nn.Linear(H, H) + nn.LayerNorm(H)).
    weight = jax.random.normal(kw, (H, H), dtype=jnp.float32) * (1.0 / math.sqrt(H))
    bias = jax.random.normal(kb, (H,), dtype=jnp.float32) * 0.02
    gamma = 1.0 + 0.1 * jax.random.normal(kg, (H,), dtype=jnp.float32)
    beta = 0.1 * jax.random.normal(kbe, (H,), dtype=jnp.float32)

    out = bert_prediction_head_transform(x, weight, bias, gamma, beta)
    out = jax.block_until_ready(out)

    ref = _reference(x, weight, bias, gamma, beta)
    assert out.shape == (B, S, H)
    assert jnp.allclose(out, ref, atol=1e-4, rtol=1e-4), "mismatch vs reference"

    print("KERNEL_OK")
</pallas_src>

<mosaic_0001>
module attributes {stable_mosaic.version = 11 : i64} {
  func.func @_fused_kernel(%arg0: i32, %arg1: memref<8x128xf32, #tpu.memory_space<vmem>>, %arg2: memref<128x128xf32, #tpu.memory_space<vmem>>, %arg3: memref<1x128xf32, #tpu.memory_space<vmem>>, %arg4: memref<1x128xf32, #tpu.memory_space<vmem>>, %arg5: memref<1x128xf32, #tpu.memory_space<vmem>>, %arg6: memref<8x128xf32, #tpu.memory_space<vmem>>) attributes {dimension_semantics = [#tpu.dimension_semantics<parallel>], iteration_bounds = array<i64: 2>, scalar_prefetch = 0 : i64, scratch_operands = 0 : i64, tpu.core_type = #tpu.core_type<tc>, window_params = [{transform_indices = @transform_0, window_bounds = array<i64: 8, 128>}, {pipeline_mode = #tpu.pipeline_mode<synchronous>, transform_indices = @transform_1, window_bounds = array<i64: 128, 128>}, {pipeline_mode = #tpu.pipeline_mode<synchronous>, transform_indices = @transform_2, window_bounds = array<i64: 1, 128>}, {pipeline_mode = #tpu.pipeline_mode<synchronous>, transform_indices = @transform_3, window_bounds = array<i64: 1, 128>}, {pipeline_mode = #tpu.pipeline_mode<synchronous>, transform_indices = @transform_4, window_bounds = array<i64: 1, 128>}, {transform_indices = @transform_5, window_bounds = array<i64: 8, 128>}]} {
    %c0 = arith.constant 0 : index
    %c0_0 = arith.constant 0 : index
    %0 = vector.load %arg1[%c0, %c0_0] : memref<8x128xf32, #tpu.memory_space<vmem>>, vector<8x128xf32>
    %c0_1 = arith.constant 0 : index
    %c0_2 = arith.constant 0 : index
    %1 = vector.load %arg2[%c0_1, %c0_2] : memref<128x128xf32, #tpu.memory_space<vmem>>, vector<128x128xf32>
    %cst = arith.constant dense<0.000000e+00> : vector<8x128xf32>
    %2 = tpu.matmul %0, %1, %cst {dimension_numbers = #tpu.dot_dimension_numbers<[1], [0], [0], [1], [0, 0, 1, 1], [], []>} : vector<8x128xf32>, vector<128x128xf32>, vector<8x128xf32> -> vector<8x128xf32>
    %c0_3 = arith.constant 0 : index
    %c0_4 = arith.constant 0 : index
    %3 = vector.load %arg3[%c0_3, %c0_4] : memref<1x128xf32, #tpu.memory_space<vmem>>, vector<1x128xf32>
    %c0_5 = arith.constant 0 : index
    %c0_6 = arith.constant 0 : index
    %4 = vector.load %arg4[%c0_5, %c0_6] : memref<1x128xf32, #tpu.memory_space<vmem>>, vector<1x128xf32>
    %c0_7 = arith.constant 0 : index
    %c0_8 = arith.constant 0 : index
    %5 = vector.load %arg5[%c0_7, %c0_8] : memref<1x128xf32, #tpu.memory_space<vmem>>, vector<1x128xf32>
    %6 = vector.broadcast %3 : vector<1x128xf32> to vector<8x128xf32>
    %7 = arith.addf %2, %6 : vector<8x128xf32>
    %cst_9 = arith.constant 5.000000e-01 : f32
    %8 = vector.broadcast %cst_9 : f32 to vector<8x128xf32>
    %9 = arith.mulf %7, %8 : vector<8x128xf32>
    %cst_10 = arith.constant 0.707106769 : f32
    %10 = vector.broadcast %cst_10 : f32 to vector<8x128xf32>
    %11 = arith.mulf %7, %10 : vector<8x128xf32>
    %12 = math.erf %11 : vector<8x128xf32>
    %cst_11 = arith.constant 1.000000e+00 : f32
    %13 = vector.broadcast %cst_11 : f32 to vector<8x128xf32>
    %14 = arith.addf %13, %12 : vector<8x128xf32>
    %15 = arith.mulf %9, %14 : vector<8x128xf32>
    %cst_12 = arith.constant dense<0.000000e+00> : vector<8xf32>
    %16 = vector.multi_reduction <add>, %15, %cst_12 [1] : vector<8x128xf32> to vector<8xf32>
    %17 = vector.shape_cast %16 : vector<8xf32> to vector<8x1xf32>
    %cst_13 = arith.constant 1.280000e+02 : f32
    %18 = vector.broadcast %cst_13 : f32 to vector<8x1xf32>
    %19 = arith.divf %17, %18 : vector<8x1xf32>
    %20 = vector.broadcast %19 : vector<8x1xf32> to vector<8x128xf32>
    %21 = arith.subf %15, %20 : vector<8x128xf32>
    %22 = arith.mulf %21, %21 : vector<8x128xf32>
    %cst_14 = arith.constant dense<0.000000e+00> : vector<8xf32>
    %23 = vector.multi_reduction <add>, %22, %cst_14 [1] : vector<8x128xf32> to vector<8xf32>
    %24 = vector.shape_cast %23 : vector<8xf32> to vector<8x1xf32>
    %cst_15 = arith.constant 1.280000e+02 : f32
    %25 = vector.broadcast %cst_15 : f32 to vector<8x1xf32>
    %26 = arith.divf %24, %25 : vector<8x1xf32>
    %cst_16 = arith.constant 9.99999996E-13 : f32
    %27 = vector.broadcast %cst_16 : f32 to vector<8x1xf32>
    %28 = arith.addf %26, %27 : vector<8x1xf32>
    %29 = math.rsqrt %28 : vector<8x1xf32>
    %30 = vector.broadcast %29 : vector<8x1xf32> to vector<8x128xf32>
    %31 = arith.mulf %21, %30 : vector<8x128xf32>
    %32 = vector.broadcast %4 : vector<1x128xf32> to vector<8x128xf32>
    %33 = arith.mulf %31, %32 : vector<8x128xf32>
    %34 = vector.broadcast %5 : vector<1x128xf32> to vector<8x128xf32>
    %35 = arith.addf %33, %34 : vector<8x128xf32>
    %c0_17 = arith.constant 0 : index
    %c0_18 = arith.constant 0 : index
    %36 = vector.load %arg6[%c0_17, %c0_18] : memref<8x128xf32, #tpu.memory_space<vmem>>, vector<8x128xf32>
    tpu.vector_store %arg6[%c0_17, %c0_18], %35 {strides = array<i32>} : memref<8x128xf32, #tpu.memory_space<vmem>>, vector<8x128xf32>,
    return
  }
  func.func @transform_0(%arg0: i32) -> (i32, i32) {
    %c0_i32 = arith.constant 0 : i32
    %c0_i32_0 = arith.constant 0 : i32
    return %arg0, %c0_i32 : i32, i32
  }
  func.func @transform_1(%arg0: i32) -> (i32, i32) {
    %c0_i32 = arith.constant 0 : i32
    %c0_i32_0 = arith.constant 0 : i32
    %c0_i32_1 = arith.constant 0 : i32
    return %c0_i32, %c0_i32_0 : i32, i32
  }
  func.func @transform_2(%arg0: i32) -> (i32, i32) {
    %c0_i32 = arith.constant 0 : i32
    %c0_i32_0 = arith.constant 0 : i32
    %c0_i32_1 = arith.constant 0 : i32
    return %c0_i32, %c0_i32_0 : i32, i32
  }
  func.func @transform_3(%arg0: i32) -> (i32, i32) {
    %c0_i32 = arith.constant 0 : i32
    %c0_i32_0 = arith.constant 0 : i32
    %c0_i32_1 = arith.constant 0 : i32
    return %c0_i32, %c0_i32_0 : i32, i32
  }
  func.func @transform_4(%arg0: i32) -> (i32, i32) {
    %c0_i32 = arith.constant 0 : i32
    %c0_i32_0 = arith.constant 0 : i32
    %c0_i32_1 = arith.constant 0 : i32
    return %c0_i32, %c0_i32_0 : i32, i32
  }
  func.func @transform_5(%arg0: i32) -> (i32, i32) {
    %c0_i32 = arith.constant 0 : i32
    %c0_i32_0 = arith.constant 0 : i32
    return %arg0, %c0_i32 : i32, i32
  }
}

</mosaic_0001>

<bundles_post_ra>
// kernel: tpu_custom_call.1
= control target key start
LH: loop header
LB: loop body
LE: loop exit
PB: predicated region body
PF: predicated region fallthrough
CT: control target
= control target key end

     0   :  { %10 = vsyncpa [#allocation3], 0  ;;  %s942_s0 = inlined_call_operand.hbm [shape: f32[16,128], index: 0, kind: input, shape index: {}]   ;;  %s943_s1 = inlined_call_operand.hbm [shape: f32[128,128], index: 1, kind: input, shape index: {}]   ;;  %s944_s2 = inlined_call_operand.vmem [shape: f32[1,128], index: 2, kind: input, shape index: {}]   ;;  %s945_s3 = inlined_call_operand.vmem [shape: f32[1,128], index: 3, kind: input, shape index: {}]   ;;  %s946_s4 = inlined_call_operand.vmem [shape: f32[1,128], index: 4, kind: input, shape index: {}]   ;;  %s947_s5 = inlined_call_operand.hbm [shape: f32[16,128], index: 5, kind: output, shape index: {}]  }
   0x1   :  { %12 = vsyncpa [#allocation3 + $0x1], 0 }
   0x2   :  { %13 = vsyncpa [#allocation6], 0 }
   0x3   :  { %14 = vsyncpa [#allocation4], 0 }
   0x4   :  { %16 = vsyncpa [#allocation4 + $0x1], 0  ;;  %s772_s18 = smov 0   ;;  %s774_s19 = smov 0  }
   0x5   :  { %s776_s20 = smov 0   ;;  %s778_s21 = smov 0  }
   0x6 LB: > { %s793_s22 = sadd.s32 4294967295, %s733_s21   ;;  %s477_s23 = sadd.s32 4294967294, %s733_s21   ;;  %s733_s21 = sphi %s778_s21, %s969_s21   ;;  %s729_s20 = sphi %s776_s20, %s968_s20   ;;  %s725_s19 = sphi %s774_s19, %s967_s19   ;;  %s721_s18 = sphi %s772_s18, %s966_s18  }
   0x7   : > { %p42_p0 = scmp.ne.s32.totalorder %s725_s19, %s721_s18  ;;  %p948_p1 = scmp.eq.s32.totalorder %s793_s22, 0 }
   0x8   : > { %p156_p3 = scmp.eq.s32.totalorder %s477_s23, 1  ;;  %p478_p5 = scmp.ge.s32.totalorder %s733_s21, 1 }
   0x9   : > { %p802_p4 = por %p948_p1, %p42_p0  ;;  %p163_p7 = scmp.lt.s32.totalorder %s733_s21, 3 }
   0xa   : > { %p807_p6 = por %p156_p3, %p42_p0  ;;  %s735_s27 = smov [#allocation5]  }
   0xb   : > { %s952_s24 = scalar_select %p802_p4, 1, 0 }
   0xc   : > { %s953_s25 = scalar_select %p807_p6, 1, 0 }
   0xd   : > { %p812_p8 = pnand %p478_p5, %p163_p7  ;;  %s175_s28 = sshll.u32 %s735_s27, 4  ;;  %s176_s28 = int_to_ptr.vmem [resolvable:$true] %s175_s28 }
   0xe   : > { %s826_s30 = sadd.s32 1, %s733_s21   ;;  %s29_s6 = sadd.s32 1, %s729_s20 }
   0xf   : > { %s954_s26 = scalar_select %p812_p8, 1, 0 }
  0x10   : > { %p554_p9 = pneg %p812_p8  ;;  %s26_s7 = ssub.s32 %s733_s21, %s826_s30 }
  0x11   : > { %s622_s8 = scalar_lea.vmem %s176_s28, 2048  ;;  %p630_p5 = scmp.lt.s32.totalorder %s176_s28, %s176_s28 }
  0x12   : > { %p821_p11 = pnand %p554_p9, %p948_p1  ;;  %p623_p13 = scmp.ne.s32.totalorder %s176_s28, %s622_s8 }
  0x13   : > { %p631_p7 = scmp.lt.s32.totalorder %s622_s8, %s622_s8 }
  0x14   : > { %p613_p12 = pneg %p821_p11 }
  0x15   : > { %p632_p10 = por %p631_p7, %p630_p5 }
  0x16   : > { %p625_p0 = pnand %p623_p13, %p613_p12 }
  0x18   : > { %p626_p3 = pneg %p625_p0 }
  0x1a   : > { %p633_p2 = pnand %p632_p10, %p626_p3 }
  0x1c   : > { %636 = shalt.err (!%p633_p2)
}
  0x1d   : > { %s736_s9 = smov 128   ;;  %s737_s10 = smov 8  }
  0x1e   : > { %557 = dma.hbm_to_vmem [thread:$0]  (!%p821_p11), %s943_s1, 2048, %s176_s28, [#allocation6], %s736_s9, %s736_s9, %s737_s10  }
  0x1f   : > { %p27_p9 = scmp.eq.s32.totalorder %s26_s7, 0  ;;  %p36_p12 = scmp.ne.s32.totalorder %s729_s20, %s725_s19 }
  0x20   : > { %p37_p10 = scmp.eq.s32.totalorder %s733_s21, 0  ;;  %p567_p2 = scmp.lt.s32.totalorder %s733_s21, 2 }
  0x21   : > { %s843_s13 = scalar_select %p27_p9, %s729_s20, %s29_s6  }
  0x22   : > { %p38_p13 = por %p37_p10, %p36_p12  ;;  %p956_p0 = scmp.eq.s32.totalorder %s793_s22, 1 }
  0x23   : > { %s198_s15 = sand.u32 1, %s729_s20   ;;  %s482_s16 = sshll.u32 %s733_s21, 7 }
  0x24   : > { %p847_p3 = por %p956_p0, %p36_p12  ;;  %s481_s17 = sshll.u32 %s198_s15, 3 }
  0x25   : > { %s856_s29 = scalar_lea.hbm %s942_s0, %s482_s16  ;;  %s202_s28 = scalar_lea.vmem [#allocation2], %s481_s17 }
  0x26   : > { %s957_s14 = scalar_select %p847_p3, 1, 0 }
  0x27   : > { %s209_s6 = sshll.u32 %s202_s28, 4  ;;  %p858_p11 = pnand %p567_p2, %p38_p13  ;;  %s210_s6 = int_to_ptr.vmem [resolvable:$true] %s209_s6 }
  0x28   : > { %s199_s8 = scalar_lea.sflag [#allocation3], %s198_s15  ;;  %s637_s9 = scalar_lea.hbm %s856_s29, 128 }
  0x29   : > { %p638_p5 = scmp.ne.s32.totalorder %s856_s29, %s637_s9  ;;  %p639_p7 = pneg %p858_p11 }
  0x2a   : > { %s642_s12 = scalar_lea.hbm %s942_s0, 256  ;;  %p643_p10 = scmp.lt.s32.totalorder %s856_s29, %s942_s0 }
  0x2b   : > { %p640_p9 = pnand %p639_p7, %p638_p5  ;;  %p644_p2 = scmp.lt.s32.totalorder %s642_s12, %s637_s9 }
  0x2d   : > { %p641_p12 = pneg %p640_p9  ;;  %p645_p13 = por %p644_p2, %p643_p10 }
  0x2f   : > { %p646_p0 = pnand %p645_p13, %p641_p12 }
  0x31   : > { %649 = shalt.err (!%p646_p0)
}
  0x32   : > { %s650_s23 = scalar_lea.vmem %s210_s6, 128  ;;  %s738_s15 = smov [#allocation2]  }
  0x33   : > { %p651_p1 = scmp.ne.s32.totalorder %s210_s6, %s650_s23  ;;  %s655_s27 = sshll.u32 %s738_s15, 4  ;;  %s656_s27 = int_to_ptr.vmem [resolvable:$false] %s655_s27 }
  0x34   : > { %s657_s28 = scalar_lea.vmem %s656_s27, 256  ;;  %p658_p5 = scmp.lt.s32.totalorder %s210_s6, %s656_s27 }
  0x35   : > { %p653_p6 = pnand %p651_p1, %p639_p7  ;;  %p659_p9 = scmp.lt.s32.totalorder %s657_s28, %s650_s23 }
  0x37   : > { %p654_p3 = pneg %p653_p6  ;;  %p660_p4 = por %p659_p9, %p658_p5 }
  0x39   : > { %p661_p8 = pnand %p660_p4, %p654_p3 }
  0x3b   : > { %664 = shalt.err (!%p661_p8)
}
  0x3c   : > { %561 = dma.hbm_to_vmem [thread:$0]  (!%p858_p11), %s856_s29, 128, %s210_s6, %s199_s8  }
  0x3d   : > { %p959_p12 = scmp.ne.s32.totalorder %s954_s26, 0 }
  0x3e   : > { %s879_s9 = sand.u32 (!%p959_p12), 1, %s725_s19   ;;  %p960_p1 = scmp.ne.s32.totalorder (!%p959_p12), %s952_s24, 0 }
  0x3f   : > { %218 = sbr.rel (%p959_p12) target bundleno = 639 (0x27f), region = 40  ;;  %s484_s10 = sshll.u32 (!%p959_p12), %s879_s9, 3 }
  0x40   : > { %s221_s11 = scalar_lea.sflag (!%p959_p12), [#allocation3], %s879_s9  ;;  %s885_s12 = scalar_lea.vmem (!%p959_p12), [#allocation2], %s484_s10 }
  0x44   : > { %708 = dma.done.wait (%p960_p1), %s221_s11, 128  }
  0x45   : > { %710 = vsyncadd (%p960_p1), %s221_s11, 4294967168  ;;  %p961_p4 = scmp.eq.s32.totalorder %s793_s22, 0 }
  0x47   : > { %712 = dma.done.wait (%p961_p4), [#allocation6], 2048   ;;  %p962_p6 = pmov %p961_p4 }
  0x48   : > { %v739_v0 = vmov 0.0   ;;  %vm740_vm0 = vmmov 0   ;;  %v271_v1 = vld [vmem:[#allocation5 + $0x78] sm:$0xff]  ;;  %v270_v2 = vld [vmem:[#allocation5 + $0x70] sm:$0xff]  ;;  %v269_v3 = vld [vmem:[#allocation5 + $0x68] sm:$0xff]  ;;  %s491_s16 = sshll.u32 %s793_s22, 7 }
  0x49   : > { %714 = vsyncadd (%p962_p6), [#allocation6], 4294965248  ;;  %511 = vmatprep.subr.mxu0 %v739_v0  ;;  %543 = vmatprep.mubr.msk.f32.mxu0 %vm740_vm0, %v739_v0  ;;  %v268_v4 = vld [vmem:[#allocation5 + $0x60] sm:$0xff]  ;;  %v267_v5 = vld [vmem:[#allocation5 + $0x58] sm:$0xff]  ;;  %s254_s17 = scalar_lea.vmem [#allocation7], %s484_s10  ;;  %s395_s28 = scalar_lea.hbm %s947_s5, %s491_s16 }
  0x4a   : > { %512 = vmatpush3.msra.mxu0 %v271_v1  ;;  %v266_v6 = vld [vmem:[#allocation5 + $0x50] sm:$0xff]  ;;  %v265_v7 = vld [vmem:[#allocation5 + $0x48] sm:$0xff]  ;;  %v264_v8 = vld [vmem:[#allocation5 + $0x40] sm:$0xff]  ;;  %s397_s23 = sshll.u32 %s254_s17, 4  ;;  %s384_s11 = scalar_lea.sflag [#allocation4], %s879_s9  ;;  %s398_s23 = int_to_ptr.vmem [resolvable:$true] %s397_s23 }
  0x4b   : > { %513 = vmatprep.subr.mxu0 %v739_v0  ;;  %v263_v9 = vld [vmem:[#allocation5 + $0x38] sm:$0xff]  ;;  %v262_v10 = vld [vmem:[#allocation5 + $0x30] sm:$0xff]  ;;  %v261_v11 = vld [vmem:[#allocation5 + $0x28] sm:$0xff]  ;;  %p963_p3 = scmp.ne.s32.totalorder %s957_s14, 0  ;;  %s741_s24 = smov [#allocation7]  }
  0x4c   : > { %514 = vmatpush3.msra.mxu0 %v270_v2  ;;  %v260_v12 = vld [vmem:[#allocation5 + $0x20] sm:$0xff]  ;;  %v259_v13 = vld [vmem:[#allocation5 + $0x18] sm:$0xff]  ;;  %v258_v14 = vld [vmem:[#allocation5 + $0x10] sm:$0xff]  ;;  %s669_s26 = sshll.u32 %s741_s24, 4  ;;  %s670_s26 = int_to_ptr.vmem [resolvable:$false] %s669_s26 }
  0x4d   : > { %515 = vmatprep.subr.mxu0 %v739_v0  ;;  %v257_v15 = vld [vmem:[#allocation5 + $0x8] sm:$0xff]  ;;  %v256_v16 = vld [vmem:[#allocation5] sm:$0xff]  ;;  %v255_v17 = vld [vmem:[%s885_s12] sm:$0xff]  ;;  %s665_s12 = scalar_lea.vmem %s398_s23, 128  ;;  %s671_s22 = scalar_lea.vmem %s670_s26, 256 }
  0x4e   : > { %516 = vmatpush3.msra.mxu0 %v269_v3  ;;  %v487_v18 = vld [vmem:[%s944_s2] ss:$0 sm:$0xff]  ;;  %p666_p8 = scmp.ne.s32.totalorder %s398_s23, %s665_s12  ;;  %p672_p10 = scmp.lt.s32.totalorder %s398_s23, %s670_s26 }
  0x4f   : > { %517 = vmatprep.subr.mxu0 %v739_v0  ;;  %v488_v35 = vld [vmem:[%s945_s3] ss:$0 sm:$0xff]  ;;  %p673_p2 = scmp.lt.s32.totalorder %s671_s22, %s665_s12 }
  0x50   : > { %518 = vmatpush3.msra.mxu0 %v268_v4  ;;  %v489_v37 = vld [vmem:[%s946_s4] ss:$0 sm:$0xff]  ;;  %p667_p11 = pnand %p666_p8, %p963_p3 }
  0x51   : > { %519 = vmatprep.subr.mxu0 %v739_v0  ;;  %p674_p13 = por %p673_p2, %p672_p10 }
  0x52   : > { %520 = vmatpush3.msra.mxu0 %v267_v5  ;;  %p668_p7 = pneg %p667_p11 }
  0x53   : > { %521 = vmatprep.subr.mxu0 %v739_v0 }
  0x54   : > { %522 = vmatpush3.msra.mxu0 %v266_v6  ;;  %p675_p0 = pnand %p674_p13, %p668_p7 }
  0x55   : > { %523 = vmatprep.subr.mxu0 %v739_v0 }
  0x56   : > { %524 = vmatpush3.msra.mxu0 %v265_v7 }
  0x57   : > { %525 = vmatprep.subr.mxu0 %v739_v0 }
  0x58   : > { %526 = vmatpush3.msra.mxu0 %v264_v8 }
  0x59   : > { %527 = vmatprep.subr.mxu0 %v739_v0 }
  0x5a   : > { %528 = vmatpush3.msra.mxu0 %v263_v9 }
  0x5b   : > { %529 = vmatprep.subr.mxu0 %v739_v0 }
  0x5c   : > { %530 = vmatpush3.msra.mxu0 %v262_v10 }
  0x5d   : > { %531 = vmatprep.subr.mxu0 %v739_v0 }
  0x5e   : > { %532 = vmatpush3.msra.mxu0 %v261_v11 }
  0x5f   : > { %533 = vmatprep.subr.mxu0 %v739_v0 }
  0x60   : > { %534 = vmatpush3.msra.mxu0 %v260_v12 }
  0x61   : > { %535 = vmatprep.subr.mxu0 %v739_v0 }
  0x62   : > { %536 = vmatpush3.msra.mxu0 %v259_v13 }
  0x63   : > { %537 = vmatprep.subr.mxu0 %v739_v0 }
  0x64   : > { %538 = vmatpush3.msra.mxu0 %v258_v14 }
  0x65   : > { %539 = vmatprep.subr.mxu0 %v739_v0 }
  0x66   : > { %540 = vmatpush3.msra.mxu0 %v257_v15 }
  0x67   : > { %541 = vmatprep.subr.mxu0 %v739_v0 }
  0x68   : > { %542 = vmatpush3.msra.mxu0 %v256_v16 }
  0x69   : > { %544 = vmatmul.mubr.f32.vlgmr.msra.gmra.mxu0 %v255_v17 }
 0x129   : > { %v347_v19 = vpop.f32.mrf.mxu0 }
 0x12a   : > { %v348_v20 = vadd.f32 %v487_v18, %v347_v19 }
 0x12b   : > { %v545_v21 = vpop.f32.mrf.mxu0 }
 0x12c   : > { %v352_v22 = vmul.f32 0.70710677, %v348_v20  ;;  %v351_v24 = vmul.f32 0.5, %v348_v20 }
 0x12e   : > { %607 = verf.f32 %v352_v22 }
 0x13b   : > { %v608_v23 = vpop.eup %607 }
 0x13c   : > { %v354_v25 = vadd.f32 1.0, %v608_v23 }
 0x13e   : > { %v355_v26 = vmul.f32 %v354_v25, %v351_v24 }
 0x140   : > { %356 = vadd.xlane.f32.xlu0 %v355_v26 }
 0x1c9   : > { %v357_v27 = vpop.xlane.xlu0 %356 }
 0x1ca   : > { %v359_v28 = vmul.f32 0.0078125, %v357_v27 }
 0x1cc   : > { %v360_v29 = vsub.f32 %v355_v26, %v359_v28 }
 0x1ce   : > { %v361_v30 = vmul.f32 %v360_v29, %v360_v29 }
 0x1d0   : > { %362 = vadd.xlane.f32.xlu0 %v361_v30 }
 0x259   : > { %v363_v31 = vpop.xlane.xlu0 %362 }
 0x25a   : > { %v364_v32 = vmul.f32 0.0078125, %v363_v31 }
 0x25c   : > { %v365_v33 = vadd.f32 1e-12, %v364_v32 }
 0x25e   : > { %609 = vrsqrt.f32 %v365_v33 }
 0x26b   : > { %v610_v34 = vpop.eup %609 }
 0x26c   : > { %v367_v36 = vmul.f32 %v610_v34, %v360_v29 }
 0x26e   : > { %v374_v38 = vmul.f32 %v488_v35, %v367_v36 }
 0x270   : > { %v381_v39 = vadd.f32 %v489_v37, %v374_v38 }
 0x272   : > { %382 = vst [vmem:[%s254_s17] sm:$0xff] %v381_v39 }
 0x273   : > { %678 = shalt.err (!%p675_p0)
}
 0x274   : > { %s679_s10 = scalar_lea.hbm %s395_s28, 128  ;;  %s683_s6 = scalar_lea.hbm %s947_s5, 256 }
 0x275   : > { %p680_p5 = scmp.ne.s32.totalorder %s395_s28, %s679_s10  ;;  %p684_p1 = scmp.lt.s32.totalorder %s395_s28, %s947_s5 }
 0x276   : > { %p685_p4 = scmp.lt.s32.totalorder %s683_s6, %s679_s10 }
 0x277   : > { %p681_p9 = pnand %p680_p5, %p963_p3 }
 0x278   : > { %p686_p6 = por %p685_p4, %p684_p1 }
 0x279   : > { %p682_p12 = pneg %p681_p9 }
 0x27b   : > { %p687_p8 = pnand %p686_p6, %p682_p12 }
 0x27d   : > { %690 = shalt.err (!%p687_p8)
}
 0x27e   : > { %552 = dma.vmem_to_hbm [thread:$0]  (%p963_p3), %s398_s23, 128, %s395_s28, %s384_s11  }
 0x27f PF: > { %s409_s16 = sand.u32 1, %s721_s18   ;;  %p964_p11 = scmp.ne.s32.totalorder %s953_s25, 0 }
 0x280   : > { %p965_p7 = scmp.ge.s32.totalorder %s733_s21, 2  ;;  %s410_s17 = scalar_lea.sflag [#allocation4], %s409_s16 }
 0x282   : > { %p563_p10 = pnand %p965_p7, %p964_p11 }
 0x284   : > { %p564_p2 = pneg %p563_p10 }
 0x286   : > { %716 = dma.done.wait (%p564_p2), %s410_s17, 128  }
 0x287   : > { %718 = vsyncadd (%p564_p2), %s410_s17, 4294967168  ;;  %p19_p13 = scmp.ge.s32.totalorder %s826_s30, 4   ;;  %s966_s18 = smov %s725_s19 }
 0x288   : > { %s967_s19 = smov %s729_s20  ;;  %s968_s20 = smov %s843_s13 }
 0x289   : > { %s969_s21 = smov %s826_s30  ;;  %21 = sbr.rel (!%p19_p13) target bundleno = 6 (0x6), region = 89 }
 0x28e   :  { %415 = vsyncpa [#allocation3], 1 }
 0x28f   :  { %417 = vsyncpa [#allocation3 + $0x1], 1 }
 0x290   :  { %418 = vsyncpa [#allocation6], 1 }
 0x291   :  { %419 = vsyncpa [#allocation4], 1 }
 0x292   :  { %421 = vsyncpa [#allocation4 + $0x1], 1 }

</bundles_post_ra>
